<compile_context>
chip_gen: v7x
topology: tpu7x:2x2x1
jax: 0.10.0
libtpu: 0.0.40
codegen_flags: <defaults>
</compile_context>

<pallas_src>
import jax
import jax.numpy as jnp
from jax.experimental import pallas as pl
from jax.experimental.pallas import tpu as pltpu


def _round_up(x, m):
    return ((x + m - 1) // m) * m


def _make_sa_kernel(num_layers, n_valid, tile_n, mask_rows):
    """Kernel: fused (TB*TN, C) MLP (matmul+bias+relu per layer) + running max."""

    def kernel(x_ref, *refs):
        # refs = (w0, b0, w1, b1, ..., out_ref, acc_ref)
        acc_ref = refs[-1]
        out_ref = refs[-2]
        params = refs[:-2]

        n_idx = pl.program_id(1)
        last = pl.num_programs(1) - 1

        @pl.when(n_idx == 0)
        def _init():
            acc_ref[...] = jnp.full(acc_ref.shape, -jnp.inf, dtype=acc_ref.dtype)

        tb, tn, cin = x_ref.shape
        # Fuse the batch tile into the matmul M dimension.
        h = x_ref[...].reshape(tb * tn, cin)

        for l in range(num_layers):
            w = params[2 * l][...]
            b = params[2 * l + 1][...]
            h = jnp.dot(h.astype(w.dtype), w, preferred_element_type=jnp.float32)
            h = jnp.maximum(h + b, 0.0)

        c_out = h.shape[-1]
        h = h.reshape(tb, tn, c_out)

        # running max over point tiles (PyTorch: torch.max(new_points, 2)).
        if mask_rows:
            # Only the final point tile contains zero-padded rows; mask them
            # with -inf there (cheap (1,TN,1) iota), plain max elsewhere.
            @pl.when(n_idx == last)
            def _masked_max():
                rows = jax.lax.broadcasted_iota(jnp.int32, (1, tn, 1), 1)
                rows = rows + n_idx * tile_n
                hv = jnp.where(rows < n_valid, h, -jnp.inf)
                acc_ref[...] = jnp.maximum(acc_ref[...], jnp.max(hv, axis=1))

            @pl.when(n_idx != last)
            def _plain_max():
                acc_ref[...] = jnp.maximum(acc_ref[...], jnp.max(h, axis=1))
        else:
            acc_ref[...] = jnp.maximum(acc_ref[...], jnp.max(h, axis=1))

        @pl.when(n_idx == last)
        def _store():
            out_ref[0] = acc_ref[...]

    return kernel


def pointnet_sa_group_all(xyz, points, folded_w, folded_b):
    """Forward of pointnet_sa_module with group_all=True.

    xyz:    (B, N, 3) float32
    points: (B, N, D) float32
    folded_w[l]: (C_in_l, C_out_l)  conv weight^T with BN scale folded in
    folded_b[l]: (1, C_out_l)       conv bias + BN shift folded in
    returns (new_xyz (B, 1, 3), new_points (B, 1, C_out_last))
    """
    B, N, _ = xyz.shape
    D = points.shape[-1]
    num_layers = len(folded_w)
    out_dtype = xyz.dtype

    c_outs = [int(w.shape[1]) for w in folded_w]
    c_pads = [_round_up(c, 128) for c in c_outs]
    c_max = max(c_pads)
    cin = 3 + D
    cin_pad = _round_up(cin, 128)

    # ---- VMEM budget: generation-aware (64 MiB on v7x, 128 MiB on v5e/v6e) ----
    try:
        vmem_cap = int(pltpu.get_tpu_info().vmem_capacity_bytes)
    except Exception:
        vmem_cap = 64 << 20  # conservative (v7x-sized) fallback
    vmem_limit = max(32 << 20, min(int(vmem_cap * 0.6), 96 << 20))

    # ---- tile selection ----
    # Keep >= 2 steps on the parallel batch axis so both v7x TensorCores get
    # work; on 1-TC chips the extra grid step costs ~0.35us and TN grows to
    # compensate (budget constrains the TB*TN product).
    TB = 1 if B < 2 else min(8, -(-B // 2))
    B_pad = _round_up(B, TB)

    weight_elems = cin_pad * c_pads[0] + sum(
        c_pads[l - 1] * c_pads[l] for l in range(1, num_layers))
    # Worst-case constant footprint (double-buffered weights/biases) + acc +
    # double-buffered output block.
    const_bytes = 2 * (weight_elems * 2 + sum(c_pads) * 4)
    fixed_bytes = const_bytes + 3 * TB * c_pads[-1] * 4
    # Per point row: double-buffered bf16 input + (current f32 + previous bf16)
    # intermediates with 2x margin for Mosaic temporaries.
    per_point_bytes = 2 * cin_pad * 2 + 2 * c_max * 4 + 2 * c_max * 2
    avail = int(vmem_limit * 0.75) - fixed_bytes

    TN = min(512, _round_up(N, 8))
    while TB * TN * per_point_bytes > avail and TN > 8:
        TN = max(8, _round_up(TN // 2, 8))
    N_pad = _round_up(N, TN)

    # ---- build concatenated, padded, bf16 input (B_pad, N_pad, cin_pad) ----
    # Zero-padding the channel dim is numerically neutral (matching weight rows
    # are zero) and makes the input DMA lane-dense / layer-0 K aligned.
    x = jnp.concatenate([xyz, points], axis=2)
    x = jnp.pad(x, ((0, B_pad - B), (0, N_pad - N), (0, cin_pad - cin)))
    x16 = x.astype(jnp.bfloat16)

    # ---- pad params: channels -> multiples of 128, weights bf16, biases f32 ----
    params = []
    w0 = jnp.zeros((cin_pad, c_pads[0]), jnp.float32)
    w0 = w0.at[:cin, : c_outs[0]].set(folded_w[0])
    b0 = jnp.zeros((1, c_pads[0]), jnp.float32).at[:, : c_outs[0]].set(folded_b[0])
    params += [w0.astype(jnp.bfloat16), b0]
    for l in range(1, num_layers):
        w = jnp.zeros((c_pads[l - 1], c_pads[l]), jnp.float32)
        w = w.at[: c_outs[l - 1], : c_outs[l]].set(folded_w[l])
        b = jnp.zeros((1, c_pads[l]), jnp.float32).at[:, : c_outs[l]].set(folded_b[l])
        params += [w.astype(jnp.bfloat16), b]

    grid = (B_pad // TB, N_pad // TN)

    # ---- cost estimate (lets XLA overlap the call with surrounding HLO) ----
    k_dims = [cin_pad] + c_pads[:-1]
    mm_elems = sum(k * n for k, n in zip(k_dims, c_pads))
    flops = 2 * TB * TN * mm_elems * grid[0] * grid[1]
    bytes_accessed = (B_pad * N_pad * cin_pad * 2 + weight_elems * 2
                      + sum(c_pads) * 4 + B_pad * c_pads[-1] * 4)
    cost = pl.CostEstimate(flops=int(flops), transcendentals=0,
                           bytes_accessed=int(bytes_accessed))

    kernel = _make_sa_kernel(num_layers, N, TN, mask_rows=(N_pad != N))

    def run(single_buffer_consts):
        # Constant weight/bias blocks are re-used every grid step; single-buffer
        # them to reclaim VMEM (falls back to default pipelining if rejected).
        const_kw = ({"pipeline_mode": pl.Buffered(1)} if single_buffer_consts else {})
        in_specs = [
            pl.BlockSpec((TB, TN, cin_pad), lambda b, n: (b, n, 0)),
            pl.BlockSpec((cin_pad, c_pads[0]), lambda b, n: (0, 0), **const_kw),
            pl.BlockSpec((1, c_pads[0]), lambda b, n: (0, 0), **const_kw),
        ]
        for l in range(1, num_layers):
            in_specs.append(pl.BlockSpec((c_pads[l - 1], c_pads[l]),
                                         lambda b, n: (0, 0), **const_kw))
            in_specs.append(pl.BlockSpec((1, c_pads[l]),
                                         lambda b, n: (0, 0), **const_kw))
        # 3-D output keeps the block fully aligned ((TB, C_pad) == full trailing
        # dims, C_pad lane-dense) for any TB.
        out_spec = pl.BlockSpec((1, TB, c_pads[-1]), lambda b, n: (b, 0, 0))
        return pl.pallas_call(
            kernel,
            out_shape=jax.ShapeDtypeStruct((B_pad // TB, TB, c_pads[-1]), jnp.float32),
            grid_spec=pltpu.PrefetchScalarGridSpec(
                num_scalar_prefetch=0,
                grid=grid,
                in_specs=in_specs,
                out_specs=out_spec,
                scratch_shapes=[pltpu.VMEM((TB, c_pads[-1]), jnp.float32)],
            ),
            compiler_params=pltpu.CompilerParams(
                dimension_semantics=("parallel", "arbitrary"),
                vmem_limit_bytes=int(vmem_limit),
            ),
            cost_estimate=cost,
        )(x16, *params)

    try:
        out = run(True)
    except Exception:
        out = run(False)

    out = out.reshape(B_pad, c_pads[-1])
    # rows >= B and channels >= c_outs[-1] are padding garbage; slice them off.
    new_points = out[:B, : c_outs[-1]].reshape(B, 1, c_outs[-1]).astype(out_dtype)
    new_xyz = jnp.zeros((B, 1, 3), dtype=out_dtype)
    return new_xyz, new_points


def init_params(in_channel, mlp, key):
    """Deterministic init of Conv2d(1x1) + BatchNorm2d params; fold BN (eval mode)
    into the conv so the kernel only needs matmul + bias per layer."""
    eps = 1e-5
    folded_w, folded_b = [], []
    c_in = in_channel
    for c_out in mlp:
        k1, k2, k3, k4, k5, k6, key = jax.random.split(key, 7)
        w = 0.1 * jax.random.normal(k1, (c_out, c_in), dtype=jnp.float32)
        b = 0.1 * jax.random.normal(k2, (c_out,), dtype=jnp.float32)
        gamma = 1.0 + 0.1 * jax.random.normal(k3, (c_out,), dtype=jnp.float32)
        beta = 0.1 * jax.random.normal(k4, (c_out,), dtype=jnp.float32)
        run_mean = 0.1 * jax.random.normal(k5, (c_out,), dtype=jnp.float32)
        run_var = jnp.abs(1.0 + 0.1 * jax.random.normal(k6, (c_out,), dtype=jnp.float32))
        scale = gamma / jnp.sqrt(run_var + eps)
        # y = BN(x @ W^T + b) = x @ (W^T * scale) + ((b - mean) * scale + beta)
        folded_w.append((w.T * scale[None, :]).astype(jnp.float32))
        folded_b.append(((b - run_mean) * scale + beta).reshape(1, c_out).astype(jnp.float32))
        c_in = c_out
    return folded_w, folded_b


def reference_forward(xyz, points, folded_w, folded_b):
    """Plain-JAX reference mirroring the kernel numerics (bf16 matmul inputs,
    f32 accumulation) for a tight correctness check."""
    x = jnp.concatenate([xyz, points], axis=2)                 # (B, N, 3+D)
    h = x.astype(jnp.bfloat16)
    h32 = None
    for w, b in zip(folded_w, folded_b):
        h32 = jax.lax.dot_general(
            h, w.astype(jnp.bfloat16),
            dimension_numbers=(((2,), (0,)), ((), ())),
            preferred_element_type=jnp.float32)
        h32 = jnp.maximum(h32 + b[None], 0.0)
        h = h32.astype(jnp.bfloat16)
    return jnp.max(h32, axis=1, keepdims=True)                 # (B, 1, C_out)


if __name__ == "__main__":
    key = jax.random.PRNGKey(0)

    def run_case(case_key, B, N, D, mlp):
        kx, kp, kw = jax.random.split(case_key, 3)
        in_channel = 3 + D
        xyz = jax.random.normal(kx, (B, N, 3), dtype=jnp.float32)
        points = jax.random.normal(kp, (B, N, D), dtype=jnp.float32)
        folded_w, folded_b = init_params(in_channel, mlp, kw)

        new_xyz, new_points = pointnet_sa_group_all(xyz, points, folded_w, folded_b)
        new_xyz = jax.block_until_ready(new_xyz)
        new_points = jax.block_until_ready(new_points)

        ref = reference_forward(xyz, points, folded_w, folded_b)
        assert new_xyz.shape == (B, 1, 3)
        assert new_points.shape == (B, 1, mlp[-1])
        max_err = float(jnp.max(jnp.abs(new_points - ref)))
        assert jnp.allclose(new_points, ref, atol=1e-2, rtol=1e-2), (
            f"mismatch vs reference (max abs err {max_err})")

    k1, k2 = jax.random.split(key)
    # small aligned shapes (B=2, N=16, D=4, mlp=[16, 32])
    run_case(k1, B=2, N=16, D=4, mlp=[16, 32])
    # unaligned N / odd B exercises the last-tile -inf mask and padded-batch paths
    run_case(k2, B=3, N=12, D=5, mlp=[8, 24])

    print("KERNEL_OK")
</pallas_src>

<mosaic_0001>
module attributes {stable_mosaic.version = 11 : i64} {
  func.func @kernel(%arg0: i32, %arg1: i32, %arg2: memref<1x16x128xbf16, #tpu.memory_space<vmem>>, %arg3: memref<128x128xbf16, #tpu.memory_space<vmem>>, %arg4: memref<1x128xf32, #tpu.memory_space<vmem>>, %arg5: memref<128x128xbf16, #tpu.memory_space<vmem>>, %arg6: memref<1x128xf32, #tpu.memory_space<vmem>>, %arg7: memref<1x1x128xf32, #tpu.memory_space<vmem>>, %arg8: memref<1x128xf32, #tpu.memory_space<vmem>>) attributes {dimension_semantics = [#tpu.dimension_semantics<parallel>, #tpu.dimension_semantics<arbitrary>], iteration_bounds = array<i64: 2, 1>, scalar_prefetch = 0 : i64, scratch_operands = 1 : i64, tpu.core_type = #tpu.core_type<tc>, window_params = [{transform_indices = @transform_0, window_bounds = array<i64: 1, 16, 128>}, {pipeline_mode = #tpu.pipeline_mode<synchronous>, transform_indices = @transform_1, window_bounds = array<i64: 128, 128>}, {pipeline_mode = #tpu.pipeline_mode<synchronous>, transform_indices = @transform_2, window_bounds = array<i64: 1, 128>}, {pipeline_mode = #tpu.pipeline_mode<synchronous>, transform_indices = @transform_3, window_bounds = array<i64: 128, 128>}, {pipeline_mode = #tpu.pipeline_mode<synchronous>, transform_indices = @transform_4, window_bounds = array<i64: 1, 128>}, {transform_indices = @transform_5, window_bounds = array<i64: 1, 1, 128>}]} {
    %c0_i32 = arith.constant 0 : i32
    %0 = arith.cmpi eq, %arg1, %c0_i32 : i32
    %1 = arith.extui %0 : i1 to i32
    %c0_i32_0 = arith.constant 0 : i32
    %2 = arith.cmpi ne, %1, %c0_i32_0 : i32
    scf.if %2 {
      %cst_21 = arith.constant 0xFF800000 : f32
      %28 = vector.broadcast %cst_21 : f32 to vector<1x128xf32>
      %c0_22 = arith.constant 0 : index
      %c0_23 = arith.constant 0 : index
      %29 = vector.load %arg8[%c0_22, %c0_23] : memref<1x128xf32, #tpu.memory_space<vmem>>, vector<1x128xf32>
      tpu.vector_store %arg8[%c0_22, %c0_23], %28 {strides = array<i32>} : memref<1x128xf32, #tpu.memory_space<vmem>>, vector<1x128xf32>,
    } else {
    }
    %c0 = arith.constant 0 : index
    %c0_1 = arith.constant 0 : index
    %c0_2 = arith.constant 0 : index
    %3 = vector.load %arg2[%c0, %c0_1, %c0_2] : memref<1x16x128xbf16, #tpu.memory_space<vmem>>, vector<1x16x128xbf16>
    %4 = vector.shape_cast %3 : vector<1x16x128xbf16> to vector<16x128xbf16>
    %c0_3 = arith.constant 0 : index
    %c0_4 = arith.constant 0 : index
    %5 = vector.load %arg3[%c0_3, %c0_4] : memref<128x128xbf16, #tpu.memory_space<vmem>>, vector<128x128xbf16>
    %c0_5 = arith.constant 0 : index
    %c0_6 = arith.constant 0 : index
    %6 = vector.load %arg4[%c0_5, %c0_6] : memref<1x128xf32, #tpu.memory_space<vmem>>, vector<1x128xf32>
    %cst = arith.constant dense<0.000000e+00> : vector<16x128xf32>
    %7 = tpu.matmul %4, %5, %cst {dimension_numbers = #tpu.dot_dimension_numbers<[1], [0], [0], [1], [0, 0, 1, 1], [], []>} : vector<16x128xbf16>, vector<128x128xbf16>, vector<16x128xf32> -> vector<16x128xf32>
    %8 = vector.broadcast %6 : vector<1x128xf32> to vector<16x128xf32>
    %9 = arith.addf %7, %8 : vector<16x128xf32>
    %cst_7 = arith.constant 0.000000e+00 : f32
    %10 = vector.broadcast %cst_7 : f32 to vector<16x128xf32>
    %11 = arith.maximumf %9, %10 : vector<16x128xf32>
    %c0_8 = arith.constant 0 : index
    %c0_9 = arith.constant 0 : index
    %12 = vector.load %arg5[%c0_8, %c0_9] : memref<128x128xbf16, #tpu.memory_space<vmem>>, vector<128x128xbf16>
    %c0_10 = arith.constant 0 : index
    %c0_11 = arith.constant 0 : index
    %13 = vector.load %arg6[%c0_10, %c0_11] : memref<1x128xf32, #tpu.memory_space<vmem>>, vector<1x128xf32>
    %14 = arith.truncf %11 : vector<16x128xf32> to vector<16x128xbf16>
    %cst_12 = arith.constant dense<0.000000e+00> : vector<16x128xf32>
    %15 = tpu.matmul %14, %12, %cst_12 {dimension_numbers = #tpu.dot_dimension_numbers<[1], [0], [0], [1], [0, 0, 1, 1], [], []>} : vector<16x128xbf16>, vector<128x128xbf16>, vector<16x128xf32> -> vector<16x128xf32>
    %16 = vector.broadcast %13 : vector<1x128xf32> to vector<16x128xf32>
    %17 = arith.addf %15, %16 : vector<16x128xf32>
    %cst_13 = arith.constant 0.000000e+00 : f32
    %18 = vector.broadcast %cst_13 : f32 to vector<16x128xf32>
    %19 = arith.maximumf %17, %18 : vector<16x128xf32>
    %20 = vector.shape_cast %19 : vector<16x128xf32> to vector<1x16x128xf32>
    %c0_14 = arith.constant 0 : index
    %c0_15 = arith.constant 0 : index
    %21 = vector.load %arg8[%c0_14, %c0_15] : memref<1x128xf32, #tpu.memory_space<vmem>>, vector<1x128xf32>
    %cst_16 = arith.constant dense<0xFF800000> : vector<1x128xf32>
    %22 = vector.multi_reduction <maximumf>, %20, %cst_16 [1] : vector<1x16x128xf32> to vector<1x128xf32>
    %23 = arith.maximumf %21, %22 : vector<1x128xf32>
    %c0_17 = arith.constant 0 : index
    %c0_18 = arith.constant 0 : index
    %24 = vector.load %arg8[%c0_17, %c0_18] : memref<1x128xf32, #tpu.memory_space<vmem>>, vector<1x128xf32>
    tpu.vector_store %arg8[%c0_17, %c0_18], %23 {strides = array<i32>} : memref<1x128xf32, #tpu.memory_space<vmem>>, vector<1x128xf32>,
    %c0_i32_19 = arith.constant 0 : i32
    %25 = arith.cmpi eq, %arg1, %c0_i32_19 : i32
    %26 = arith.extui %25 : i1 to i32
    %c0_i32_20 = arith.constant 0 : i32
    %27 = arith.cmpi ne, %26, %c0_i32_20 : i32
    scf.if %27 {
      %c0_21 = arith.constant 0 : index
      %c0_22 = arith.constant 0 : index
      %28 = vector.load %arg8[%c0_21, %c0_22] : memref<1x128xf32, #tpu.memory_space<vmem>>, vector<1x128xf32>
      %c0_23 = arith.constant 0 : index
      %c0_24 = arith.constant 0 : index
      %c0_25 = arith.constant 0 : index
      %29 = vector.load %arg7[%c0_23, %c0_24, %c0_25] : memref<1x1x128xf32, #tpu.memory_space<vmem>>, vector<1x1x128xf32>
      %30 = vector.shape_cast %29 : vector<1x1x128xf32> to vector<1x128xf32>
      %31 = vector.shape_cast %28 : vector<1x128xf32> to vector<1x1x128xf32>
      tpu.vector_store %arg7[%c0_23, %c0_24, %c0_25], %31 {strides = array<i32>} : memref<1x1x128xf32, #tpu.memory_space<vmem>>, vector<1x1x128xf32>,
    } else {
    }
    return
  }
  func.func @transform_0(%arg0: i32, %arg1: i32) -> (i32, i32, i32) {
    %c0_i32 = arith.constant 0 : i32
    %c0_i32_0 = arith.constant 0 : i32
    return %arg0, %arg1, %c0_i32 : i32, i32, i32
  }
  func.func @transform_1(%arg0: i32, %arg1: i32) -> (i32, i32) {
    %c0_i32 = arith.constant 0 : i32
    %c0_i32_0 = arith.constant 0 : i32
    %c0_i32_1 = arith.constant 0 : i32
    return %c0_i32, %c0_i32_0 : i32, i32
  }
  func.func @transform_2(%arg0: i32, %arg1: i32) -> (i32, i32) {
    %c0_i32 = arith.constant 0 : i32
    %c0_i32_0 = arith.constant 0 : i32
    %c0_i32_1 = arith.constant 0 : i32
    return %c0_i32, %c0_i32_0 : i32, i32
  }
  func.func @transform_3(%arg0: i32, %arg1: i32) -> (i32, i32) {
    %c0_i32 = arith.constant 0 : i32
    %c0_i32_0 = arith.constant 0 : i32
    %c0_i32_1 = arith.constant 0 : i32
    return %c0_i32, %c0_i32_0 : i32, i32
  }
  func.func @transform_4(%arg0: i32, %arg1: i32) -> (i32, i32) {
    %c0_i32 = arith.constant 0 : i32
    %c0_i32_0 = arith.constant 0 : i32
    %c0_i32_1 = arith.constant 0 : i32
    return %c0_i32, %c0_i32_0 : i32, i32
  }
  func.func @transform_5(%arg0: i32, %arg1: i32) -> (i32, i32, i32) {
    %c0_i32 = arith.constant 0 : i32
    %c0_i32_0 = arith.constant 0 : i32
    %c0_i32_1 = arith.constant 0 : i32
    return %arg0, %c0_i32, %c0_i32_0 : i32, i32, i32
  }
}

module attributes {stable_mosaic.version = 11 : i64} {
  func.func @kernel(%arg0: i32, %arg1: i32, %arg2: memref<1x16x128xbf16, #tpu.memory_space<vmem>>, %arg3: memref<128x128xbf16, #tpu.memory_space<vmem>>, %arg4: memref<1x128xf32, #tpu.memory_space<vmem>>, %arg5: memref<128x128xbf16, #tpu.memory_space<vmem>>, %arg6: memref<1x128xf32, #tpu.memory_space<vmem>>, %arg7: memref<1x1x128xf32, #tpu.memory_space<vmem>>, %arg8: memref<1x128xf32, #tpu.memory_space<vmem>>) attributes {dimension_semantics = [#tpu.dimension_semantics<parallel>, #tpu.dimension_semantics<arbitrary>], iteration_bounds = array<i64: 2, 1>, scalar_prefetch = 0 : i64, scratch_operands = 1 : i64, tpu.core_type = #tpu.core_type<tc>, window_params = [{transform_indices = @transform_0, window_bounds = array<i64: 1, 16, 128>}, {pipeline_mode = #tpu.pipeline_mode<synchronous>, transform_indices = @transform_1, window_bounds = array<i64: 128, 128>}, {pipeline_mode = #tpu.pipeline_mode<synchronous>, transform_indices = @transform_2, window_bounds = array<i64: 1, 128>}, {pipeline_mode = #tpu.pipeline_mode<synchronous>, transform_indices = @transform_3, window_bounds = array<i64: 128, 128>}, {pipeline_mode = #tpu.pipeline_mode<synchronous>, transform_indices = @transform_4, window_bounds = array<i64: 1, 128>}, {transform_indices = @transform_5, window_bounds = array<i64: 1, 1, 128>}]} {
    %c0_i32 = arith.constant 0 : i32
    %0 = arith.cmpi eq, %arg1, %c0_i32 : i32
    %1 = arith.extui %0 : i1 to i32
    %c0_i32_0 = arith.constant 0 : i32
    %2 = arith.cmpi ne, %1, %c0_i32_0 : i32
    scf.if %2 {
      %cst_21 = arith.constant 0xFF800000 : f32
      %28 = vector.broadcast %cst_21 : f32 to vector<1x128xf32>
      %c0_22 = arith.constant 0 : index
      %c0_23 = arith.constant 0 : index
      %29 = vector.load %arg8[%c0_22, %c0_23] : memref<1x128xf32, #tpu.memory_space<vmem>>, vector<1x128xf32>
      tpu.vector_store %arg8[%c0_22, %c0_23], %28 {strides = array<i32>} : memref<1x128xf32, #tpu.memory_space<vmem>>, vector<1x128xf32>,
    } else {
    }
    %c0 = arith.constant 0 : index
    %c0_1 = arith.constant 0 : index
    %c0_2 = arith.constant 0 : index
    %3 = vector.load %arg2[%c0, %c0_1, %c0_2] : memref<1x16x128xbf16, #tpu.memory_space<vmem>>, vector<1x16x128xbf16>
    %4 = vector.shape_cast %3 : vector<1x16x128xbf16> to vector<16x128xbf16>
    %c0_3 = arith.constant 0 : index
    %c0_4 = arith.constant 0 : index
    %5 = vector.load %arg3[%c0_3, %c0_4] : memref<128x128xbf16, #tpu.memory_space<vmem>>, vector<128x128xbf16>
    %c0_5 = arith.constant 0 : index
    %c0_6 = arith.constant 0 : index
    %6 = vector.load %arg4[%c0_5, %c0_6] : memref<1x128xf32, #tpu.memory_space<vmem>>, vector<1x128xf32>
    %cst = arith.constant dense<0.000000e+00> : vector<16x128xf32>
    %7 = tpu.matmul %4, %5, %cst {dimension_numbers = #tpu.dot_dimension_numbers<[1], [0], [0], [1], [0, 0, 1, 1], [], []>} : vector<16x128xbf16>, vector<128x128xbf16>, vector<16x128xf32> -> vector<16x128xf32>
    %8 = vector.broadcast %6 : vector<1x128xf32> to vector<16x128xf32>
    %9 = arith.addf %7, %8 : vector<16x128xf32>
    %cst_7 = arith.constant 0.000000e+00 : f32
    %10 = vector.broadcast %cst_7 : f32 to vector<16x128xf32>
    %11 = arith.maximumf %9, %10 : vector<16x128xf32>
    %c0_8 = arith.constant 0 : index
    %c0_9 = arith.constant 0 : index
    %12 = vector.load %arg5[%c0_8, %c0_9] : memref<128x128xbf16, #tpu.memory_space<vmem>>, vector<128x128xbf16>
    %c0_10 = arith.constant 0 : index
    %c0_11 = arith.constant 0 : index
    %13 = vector.load %arg6[%c0_10, %c0_11] : memref<1x128xf32, #tpu.memory_space<vmem>>, vector<1x128xf32>
    %14 = arith.truncf %11 : vector<16x128xf32> to vector<16x128xbf16>
    %cst_12 = arith.constant dense<0.000000e+00> : vector<16x128xf32>
    %15 = tpu.matmul %14, %12, %cst_12 {dimension_numbers = #tpu.dot_dimension_numbers<[1], [0], [0], [1], [0, 0, 1, 1], [], []>} : vector<16x128xbf16>, vector<128x128xbf16>, vector<16x128xf32> -> vector<16x128xf32>
    %16 = vector.broadcast %13 : vector<1x128xf32> to vector<16x128xf32>
    %17 = arith.addf %15, %16 : vector<16x128xf32>
    %cst_13 = arith.constant 0.000000e+00 : f32
    %18 = vector.broadcast %cst_13 : f32 to vector<16x128xf32>
    %19 = arith.maximumf %17, %18 : vector<16x128xf32>
    %20 = vector.shape_cast %19 : vector<16x128xf32> to vector<1x16x128xf32>
    %c0_14 = arith.constant 0 : index
    %c0_15 = arith.constant 0 : index
    %21 = vector.load %arg8[%c0_14, %c0_15] : memref<1x128xf32, #tpu.memory_space<vmem>>, vector<1x128xf32>
    %cst_16 = arith.constant dense<0xFF800000> : vector<1x128xf32>
    %22 = vector.multi_reduction <maximumf>, %20, %cst_16 [1] : vector<1x16x128xf32> to vector<1x128xf32>
    %23 = arith.maximumf %21, %22 : vector<1x128xf32>
    %c0_17 = arith.constant 0 : index
    %c0_18 = arith.constant 0 : index
    %24 = vector.load %arg8[%c0_17, %c0_18] : memref<1x128xf32, #tpu.memory_space<vmem>>, vector<1x128xf32>
    tpu.vector_store %arg8[%c0_17, %c0_18], %23 {strides = array<i32>} : memref<1x128xf32, #tpu.memory_space<vmem>>, vector<1x128xf32>,
    %c0_i32_19 = arith.constant 0 : i32
    %25 = arith.cmpi eq, %arg1, %c0_i32_19 : i32
    %26 = arith.extui %25 : i1 to i32
    %c0_i32_20 = arith.constant 0 : i32
    %27 = arith.cmpi ne, %26, %c0_i32_20 : i32
    scf.if %27 {
      %c0_21 = arith.constant 0 : index
      %c0_22 = arith.constant 0 : index
      %28 = vector.load %arg8[%c0_21, %c0_22] : memref<1x128xf32, #tpu.memory_space<vmem>>, vector<1x128xf32>
      %c0_23 = arith.constant 0 : index
      %c0_24 = arith.constant 0 : index
      %c0_25 = arith.constant 0 : index
      %29 = vector.load %arg7[%c0_23, %c0_24, %c0_25] : memref<1x1x128xf32, #tpu.memory_space<vmem>>, vector<1x1x128xf32>
      %30 = vector.shape_cast %29 : vector<1x1x128xf32> to vector<1x128xf32>
      %31 = vector.shape_cast %28 : vector<1x128xf32> to vector<1x1x128xf32>
      tpu.vector_store %arg7[%c0_23, %c0_24, %c0_25], %31 {strides = array<i32>} : memref<1x1x128xf32, #tpu.memory_space<vmem>>, vector<1x1x128xf32>,
    } else {
    }
    return
  }
  func.func @transform_0(%arg0: i32, %arg1: i32) -> (i32, i32, i32) {
    %c0_i32 = arith.constant 0 : i32
    %c0_i32_0 = arith.constant 0 : i32
    return %arg0, %arg1, %c0_i32 : i32, i32, i32
  }
  func.func @transform_1(%arg0: i32, %arg1: i32) -> (i32, i32) {
    %c0_i32 = arith.constant 0 : i32
    %c0_i32_0 = arith.constant 0 : i32
    %c0_i32_1 = arith.constant 0 : i32
    return %c0_i32, %c0_i32_0 : i32, i32
  }
  func.func @transform_2(%arg0: i32, %arg1: i32) -> (i32, i32) {
    %c0_i32 = arith.constant 0 : i32
    %c0_i32_0 = arith.constant 0 : i32
    %c0_i32_1 = arith.constant 0 : i32
    return %c0_i32, %c0_i32_0 : i32, i32
  }
  func.func @transform_3(%arg0: i32, %arg1: i32) -> (i32, i32) {
    %c0_i32 = arith.constant 0 : i32
    %c0_i32_0 = arith.constant 0 : i32
    %c0_i32_1 = arith.constant 0 : i32
    return %c0_i32, %c0_i32_0 : i32, i32
  }
  func.func @transform_4(%arg0: i32, %arg1: i32) -> (i32, i32) {
    %c0_i32 = arith.constant 0 : i32
    %c0_i32_0 = arith.constant 0 : i32
    %c0_i32_1 = arith.constant 0 : i32
    return %c0_i32, %c0_i32_0 : i32, i32
  }
  func.func @transform_5(%arg0: i32, %arg1: i32) -> (i32, i32, i32) {
    %c0_i32 = arith.constant 0 : i32
    %c0_i32_0 = arith.constant 0 : i32
    %c0_i32_1 = arith.constant 0 : i32
    return %arg0, %c0_i32, %c0_i32_0 : i32, i32, i32
  }
}

</mosaic_0001>

<bundles_post_ra>
// kernel: tpu_custom_call.1
= control target key start
LH: loop header
LB: loop body
LE: loop exit
PB: predicated region body
PF: predicated region fallthrough
CT: control target
= control target key end

     0   :  { %10 = vsyncpa [#allocation4], 0  ;;  %s1339_s0 = inlined_call_operand.hbm [shape: bf16[2,16,128], index: 0, kind: input, shape index: {}]   ;;  %s1340_s1 = inlined_call_operand.hbm [shape: bf16[128,128], index: 1, kind: input, shape index: {}]   ;;  %s1341_s2 = inlined_call_operand.vmem [shape: f32[1,128], index: 2, kind: input, shape index: {}]   ;;  %s1342_s3 = inlined_call_operand.hbm [shape: bf16[128,128], index: 3, kind: input, shape index: {}]   ;;  %s1343_s4 = inlined_call_operand.vmem [shape: f32[1,128], index: 4, kind: input, shape index: {}]   ;;  %s1344_s5 = inlined_call_operand.hbm [shape: f32[2,1,128], index: 5, kind: output, shape index: {}]  }
   0x1   :  { %12 = vsyncpa [#allocation4 + $0x1], 0 }
   0x2   :  { %13 = vsyncpa [#allocation7], 0 }
   0x3   :  { %14 = vsyncpa [#allocation5], 0 }
   0x4   :  { %16 = vsyncpa [#allocation5 + $0x1], 0  ;;  %s1067_s18 = smov 0   ;;  %s1069_s19 = smov 0  }
   0x5   :  { %s1071_s20 = smov 0   ;;  %s1073_s21 = smov 0  }
   0x6   :  { %s1075_s22 = smov 0   ;;  %s1077_s23 = smov 0  }
   0x7 LB: > { %s655_s24 = sadd.s32 4294967295, %s1026_s23   ;;  %s656_s25 = sadd.s32 4294967294, %s1026_s23   ;;  %s1026_s23 = sphi %s1077_s23, %s22_s23   ;;  %s1022_s22 = sphi %s1075_s22, %s1368_s22   ;;  %s1018_s21 = sphi %s1073_s21, %s1367_s21   ;;  %s1014_s20 = sphi %s1071_s20, %s1366_s20   ;;  %s1010_s19 = sphi %s1069_s19, %s1365_s19   ;;  %s1006_s18 = sphi %s1067_s18, %s1364_s18  }
   0x8   : > { %p56_p0 = scmp.ne.s32.totalorder %s1010_s19, %s1006_s18  ;;  %p1101_p1 = scmp.eq.s32.totalorder %s655_s24, 0 }
   0x9   : > { %p1105_p2 = scmp.eq.s32.totalorder %s655_s24, 1  ;;  %p170_p3 = scmp.eq.s32.totalorder %s656_s25, 1 }
   0xa   : > { %s1350_s26 = scalar_select %p1101_p1, 1, 0 }
   0xb   : > { %p1111_p4 = por %p1101_p1, %p56_p0  ;;  %p657_p5 = scmp.ge.s32.totalorder %s1026_s23, 1 }
   0xc   : > { %p1116_p6 = por %p170_p3, %p56_p0  ;;  %p177_p7 = scmp.lt.s32.totalorder %s1026_s23, 3 }
   0xd   : > { %s1352_s28 = scalar_select %p1111_p4, 1, 0 }
   0xe   : > { %s1353_s29 = scalar_select %p1116_p6, 1, 0 }
   0xf   : > { %p1121_p8 = pnand %p657_p5, %p177_p7  ;;  %s1028_s6 = smov [#allocation6]  }
  0x10   : > { %s189_s7 = sshll.u32 %s1028_s6, 4  ;;  %s1029_s9 = smov [#allocation8]   ;;  %s1125_s7 = int_to_ptr.vmem [resolvable:$true] %s189_s7 }
  0x11   : > { %p761_p9 = pneg %p1121_p8  ;;  %s205_s10 = sshll.u32 %s1029_s9, 4  ;;  %s1136_s10 = int_to_ptr.vmem [resolvable:$true] %s205_s10 }
  0x12   : > { %s854_s13 = scalar_lea.hbm %s1340_s1, 1024 }
  0x13   : > { %p1132_p11 = pnand %p761_p9, %p1101_p1  ;;  %p855_p12 = scmp.ne.s32.totalorder %s1340_s1, %s854_s13 }
  0x14   : > { %p861_p5 = scmp.lt.u32.totalorder %s854_s13, %s1340_s1 }
  0x15   : > { %p856_p13 = pneg %p1132_p11 }
  0x17   : > { %p857_p0 = pnand %p856_p13, %p855_p12 }
  0x19   : > { %p858_p3 = pneg %p857_p0 }
  0x1b   : > { %p863_p7 = pnand %p861_p5, %p858_p3 }
  0x1d   : > { %866 = shalt.err (!%p863_p7)
}
  0x1e   : > { %s867_s24 = scalar_lea.vmem %s1125_s7, 1024  ;;  %p875_p1 = scmp.lt.s32.totalorder %s1125_s7, %s1125_s7 }
  0x1f   : > { %p868_p9 = scmp.ne.s32.totalorder %s1125_s7, %s867_s24  ;;  %p876_p12 = scmp.lt.s32.totalorder %s867_s24, %s867_s24 }
  0x21   : > { %p870_p10 = pnand %p868_p9, %p856_p13  ;;  %p877_p0 = por %p876_p12, %p875_p1 }
  0x23   : > { %p871_p6 = pneg %p870_p10 }
  0x25   : > { %p878_p4 = pnand %p877_p0, %p871_p6 }
  0x27   : > { %881 = shalt.err (!%p878_p4)
}
  0x28   : > { %s1348_s25 = smov 64   ;;  %s1031_s6 = smov 4  }
  0x29   : > { %764 = dma.hbm_to_vmem [thread:$0]  (!%p1132_p11), %s1340_s1, 1024, %s1125_s7, [#allocation7], %s1348_s25, %s1348_s25, %s1031_s6  }
  0x2a   : > { %s882_s14 = scalar_lea.hbm %s1342_s3, 1024 }
  0x2b   : > { %p883_p1 = scmp.ne.s32.totalorder %s1342_s3, %s882_s14  ;;  %p889_p10 = scmp.lt.u32.totalorder %s882_s14, %s1342_s3 }
  0x2d   : > { %p885_p4 = pnand %p883_p1, %p856_p13 }
  0x2f   : > { %p886_p6 = pneg %p885_p4 }
  0x31   : > { %p891_p3 = pnand %p889_p10, %p886_p6 }
  0x33   : > { %894 = shalt.err (!%p891_p3)
}
  0x34   : > { %s895_s7 = scalar_lea.vmem %s1136_s10, 1024  ;;  %p903_p12 = scmp.lt.s32.totalorder %s1136_s10, %s1136_s10 }
  0x35   : > { %p896_p5 = scmp.ne.s32.totalorder %s1136_s10, %s895_s7  ;;  %p904_p0 = scmp.lt.s32.totalorder %s895_s7, %s895_s7 }
  0x37   : > { %p898_p7 = pnand %p896_p5, %p856_p13  ;;  %p905_p1 = por %p904_p0, %p903_p12 }
  0x39   : > { %p899_p9 = pneg %p898_p7 }
  0x3b   : > { %p906_p4 = pnand %p905_p1, %p899_p9 }
  0x3d   : > { %909 = shalt.err (!%p906_p4)
}
  0x3e   : > { %767 = dma.hbm_to_vmem [thread:$0]  (!%p1132_p11), %s1342_s3, 1024, %s1136_s10, [#allocation7], %s1348_s25, %s1348_s25, %s1031_s6  }
  0x3f   : > { %s34_s8 = sadd.s32 1, %s1022_s22  ;;  %s43_s12 = sadd.s32 1, %s1014_s20 }
  0x40   : > { %p36_p13 = scmp.ge.s32.totalorder %s34_s8, 2  ;;  %p50_p6 = scmp.ne.s32.totalorder %s1014_s20, %s1010_s19 }
  0x41   : > { %p51_p10 = scmp.eq.s32.totalorder %s1026_s23, 0  ;;  %p778_p3 = scmp.lt.s32.totalorder %s1026_s23, 2 }
  0x42   : > { %s1370_s8 = smov (%p36_p13, %s34_s8), 0  ;;  %p1206_p7 = por %p1105_p2, %p50_p6 }
  0x43   : > { %p52_p5 = por %p51_p10, %p50_p6  ;;  %s38_s14 = ssub.s32 %s1022_s22, %s1370_s8 }
  0x44   : > { %s1356_s13 = scalar_select %p1206_p7, 1, 0 }
  0x45   : > { %s222_s15 = sand.u32 1, %s1014_s20   ;;  %p41_p9 = scmp.eq.s32.totalorder %s38_s14, 0 }
  0x46   : > { %s661_s10 = sshll.u32 %s222_s15, 3  ;;  %s690_s16 = sshll.u32 %s1022_s22, 7 }
  0x47   : > { %s1215_s17 = scalar_select %p41_p9, %s1014_s20, %s43_s12  }
  0x48   : > { %s1220_s9 = scalar_lea.hbm %s1339_s0, %s690_s16  ;;  %s226_s27 = scalar_lea.vmem [#allocation3], %s661_s10 }
  0x49   : > { %s235_s11 = sshll.u32 %s226_s27, 4  ;;  %p1224_p2 = pnand %p778_p3, %p52_p5  ;;  %s1228_s11 = int_to_ptr.vmem [resolvable:$true] %s235_s11 }
  0x4a   : > { %s1230_s12 = scalar_lea.sflag [#allocation4], %s222_s15  ;;  %s910_s14 = scalar_lea.hbm %s1220_s9, 128 }
  0x4b   : > { %p911_p11 = scmp.ne.s32.totalorder %s1220_s9, %s910_s14  ;;  %p912_p12 = pneg %p1224_p2 }
  0x4c   : > { %s915_s24 = scalar_lea.hbm %s1339_s0, 256  ;;  %p916_p4 = scmp.lt.u32.totalorder %s1220_s9, %s1339_s0 }
  0x4d   : > { %p913_p0 = pnand %p912_p12, %p911_p11  ;;  %p917_p13 = scmp.lt.u32.totalorder %s915_s24, %s910_s14 }
  0x4e   : > { %p919_p10 = scmp.lt.u32.totalorder %s910_s14, %s1220_s9 }
  0x4f   : > { %p914_p1 = pneg %p913_p0  ;;  %p918_p6 = por %p917_p13, %p916_p4 }
  0x51   : > { %p920_p3 = por %p919_p10, %p918_p6 }
  0x53   : > { %p921_p5 = pnand %p920_p3, %p914_p1 }
  0x55   : > { %924 = shalt.err (!%p921_p5)
}
  0x56   : > { %s925_s15 = scalar_lea.vmem %s1228_s11, 128  ;;  %s1032_s10 = smov [#allocation3]  }
  0x57   : > { %p926_p9 = scmp.ne.s32.totalorder %s1228_s11, %s925_s15  ;;  %s930_s16 = sshll.u32 %s1032_s10, 4  ;;  %s931_s16 = int_to_ptr.vmem [resolvable:$false] %s930_s16 }
  0x58   : > { %s932_s7 = scalar_lea.vmem %s931_s16, 256  ;;  %p933_p7 = scmp.lt.s32.totalorder %s1228_s11, %s931_s16 }
  0x59   : > { %p928_p11 = pnand %p926_p9, %p912_p12  ;;  %p934_p4 = scmp.lt.s32.totalorder %s932_s7, %s925_s15 }
  0x5b   : > { %p929_p0 = pneg %p928_p11  ;;  %p935_p13 = por %p934_p4, %p933_p7 }
  0x5d   : > { %p936_p6 = pnand %p935_p13, %p929_p0 }
  0x5f   : > { %939 = shalt.err (!%p936_p6)
}
  0x60   : > { %s1358_s14 = smov 64   ;;  %247 = sbr.rel (%p1121_p8) target bundleno = 617 (0x269), region = 40 }
  0x61   : > { %771 = dma.hbm_to_vmem [thread:$0]  (!%p1224_p2), %s1220_s9, 128, %s1228_s11, %s1230_s12, %s1358_s14, %s1358_s14, %s1031_s6  }
  0x62   : > { %s1264_s24 = sand.u32 (!%p1121_p8), 1, %s1010_s19   ;;  %p1359_p7 = scmp.ne.s32.totalorder (!%p1121_p8), %s1352_s28, 0 }
  0x63   : > { %s665_s27 = sshll.u32 (!%p1121_p8), %s1264_s24, 3  ;;  %s250_s15 = scalar_lea.sflag (!%p1121_p8), [#allocation4], %s1264_s24 }
  0x64   : > { %s1268_s10 = scalar_lea.vmem (!%p1121_p8), [#allocation3], %s665_s27 }
  0x67   : > { %993 = dma.done.wait (%p1359_p7), %s250_s15, 128  }
  0x68   : > { %995 = vsyncadd (%p1359_p7), %s250_s15, 4294967168  ;;  %p1360_p2 = scmp.ne.s32.totalorder %s1350_s26, 0 }
  0x6a   : > { %997 = dma.done.wait (%p1360_p2), [#allocation7], 2048  }
  0x6b   : > { %999 = vsyncadd (%p1360_p2), [#allocation7], 4294965248  ;;  %v1033_v0 = vmov 0.0   ;;  %vm1034_vm0 = vmmov 0   ;;  %v837_v1 = vld [vmem:[#allocation6] sm:$0xff]   ;;  %v838_v2 = vld [vmem:[#allocation6 + $0x8] sm:$0xff]  }
  0x6c   : > { %709 = vmatprep.subr.bf16.mxu0 %v1033_v0  ;;  %725 = vmatprep.mubr.msk.bf16.mxu0 %vm1034_vm0, %v1033_v0  ;;  %v839_v3 = vld [vmem:[#allocation6 + $0x10] sm:$0xff]   ;;  %v846_v4 = vld [vmem:[#allocation8] sm:$0xff]   ;;  %v840_v5 = vld [vmem:[#allocation6 + $0x18] sm:$0xff]   ;;  %v1035_v28 = vmov -inf   ;;  %s687_s6 = sshll.u32 %s1018_s21, 4  ;;  %s286_s9 = scalar_lea.vmem [#allocation9], %s1264_s24 }
  0x6d   : > { %729 = vmatprep.subr.bf16.mxu1 %v1033_v0  ;;  %745 = vmatprep.mubr.msk.bf16.mxu1 %vm1034_vm0, %v1033_v0  ;;  %v847_v6 = vld [vmem:[#allocation8 + $0x8] sm:$0xff]   ;;  %v841_v7 = vld [vmem:[#allocation6 + $0x20] sm:$0xff]   ;;  %v848_v8 = vld [vmem:[#allocation8 + $0x10] sm:$0xff]   ;;  %293 = vst [vmem:[#allocation2] sm:$0x1] %v1035_v28  ;;  %s559_s11 = sshll.u32 %s286_s9, 4  ;;  %s1290_s7 = scalar_lea.hbm %s1344_s5, %s687_s6  ;;  %s1292_s11 = int_to_ptr.vmem [resolvable:$true] %s559_s11 }
  0x6e   : > { %710 = vmatpush3.bf16.msra.mxu0 %v837_v1  ;;  %730 = vmatpush3.bf16.msra.mxu1 %v846_v4  ;;  %v842_v9 = vld [vmem:[#allocation6 + $0x28] sm:$0xff]   ;;  %v849_v10 = vld [vmem:[#allocation8 + $0x18] sm:$0xff]   ;;  %v843_v11 = vld [vmem:[#allocation6 + $0x30] sm:$0xff]   ;;  %s547_s14 = scalar_lea.sflag [#allocation5], %s1264_s24  ;;  %s940_s27 = scalar_lea.vmem %s1292_s11, 16 }
  0x6f   : > { %711 = vmatprep.subr.bf16.mxu0 %v1033_v0  ;;  %731 = vmatprep.subr.bf16.mxu1 %v1033_v0  ;;  %v850_v12 = vld [vmem:[#allocation8 + $0x20] sm:$0xff]   ;;  %v844_v13 = vld [vmem:[#allocation6 + $0x38] sm:$0xff]   ;;  %v851_v14 = vld [vmem:[#allocation8 + $0x28] sm:$0xff]   ;;  %p941_p8 = scmp.ne.s32.totalorder %s1292_s11, %s940_s27  ;;  %p1361_p12 = scmp.ne.s32.totalorder %s1356_s13, 0 }
  0x70   : > { %v845_v15 = vld [vmem:[%s1268_s10] sm:$0xff]   ;;  %v668_v18 = vld [vmem:[%s1341_s2] ss:$0 sm:$0xff]  ;;  %s1036_s21 = smov [#allocation9]  }
  0x71   : > { %v852_v16 = vld [vmem:[#allocation8 + $0x30] sm:$0xff]   ;;  %v853_v17 = vld [vmem:[#allocation8 + $0x38] sm:$0xff]   ;;  %v678_v29 = vld [vmem:[%s1343_s4] ss:$0 sm:$0xff]  ;;  %p942_p1 = pnand %p941_p8, %p1361_p12  ;;  %s944_s15 = sshll.u32 %s1036_s21, 4  ;;  %s945_s15 = int_to_ptr.vmem [resolvable:$false] %s944_s15 }
  0x72   : > { %712 = vmatpush3.bf16.msra.mxu0 %v838_v2  ;;  %732 = vmatpush3.bf16.msra.mxu1 %v847_v6  ;;  %s946_s10 = scalar_lea.vmem %s945_s15, 32  ;;  %p947_p3 = scmp.lt.s32.totalorder %s1292_s11, %s945_s15 }
  0x73   : > { %713 = vmatprep.subr.bf16.mxu0 %v1033_v0  ;;  %733 = vmatprep.subr.bf16.mxu1 %v1033_v0  ;;  %p943_p10 = pneg %p942_p1  ;;  %p948_p5 = scmp.lt.s32.totalorder %s946_s10, %s940_s27 }
  0x74   : > { %v531_v44 = vld [vmem:[#allocation2] sm:$0x1] }
  0x75   : > { %p949_p9 = por %p948_p5, %p947_p3 }
  0x76   : > { %714 = vmatpush3.bf16.msra.mxu0 %v839_v3  ;;  %734 = vmatpush3.bf16.msra.mxu1 %v848_v8 }
  0x77   : > { %715 = vmatprep.subr.bf16.mxu0 %v1033_v0  ;;  %735 = vmatprep.subr.bf16.mxu1 %v1033_v0  ;;  %p950_p11 = pnand %p949_p9, %p943_p10 }
  0x7a   : > { %716 = vmatpush3.bf16.msra.mxu0 %v840_v5  ;;  %736 = vmatpush3.bf16.msra.mxu1 %v849_v10 }
  0x7b   : > { %717 = vmatprep.subr.bf16.mxu0 %v1033_v0  ;;  %737 = vmatprep.subr.bf16.mxu1 %v1033_v0 }
  0x7e   : > { %718 = vmatpush3.bf16.msra.mxu0 %v841_v7  ;;  %738 = vmatpush3.bf16.msra.mxu1 %v850_v12 }
  0x7f   : > { %719 = vmatprep.subr.bf16.mxu0 %v1033_v0  ;;  %739 = vmatprep.subr.bf16.mxu1 %v1033_v0 }
  0x82   : > { %720 = vmatpush3.bf16.msra.mxu0 %v842_v9  ;;  %740 = vmatpush3.bf16.msra.mxu1 %v851_v14 }
  0x83   : > { %721 = vmatprep.subr.bf16.mxu0 %v1033_v0  ;;  %741 = vmatprep.subr.bf16.mxu1 %v1033_v0 }
  0x86   : > { %722 = vmatpush3.bf16.msra.mxu0 %v843_v11  ;;  %742 = vmatpush3.bf16.msra.mxu1 %v852_v16 }
  0x87   : > { %723 = vmatprep.subr.bf16.mxu0 %v1033_v0  ;;  %743 = vmatprep.subr.bf16.mxu1 %v1033_v0 }
  0x8a   : > { %724 = vmatpush3.bf16.msra.mxu0 %v844_v13  ;;  %744 = vmatpush3.bf16.msra.mxu1 %v853_v17 }
  0x8d   : > { %726 = vmatmul.mubr.bf16.vlgmr.msra.gmra.mrb[0].mxu0 %v845_v15 }
 0x160   : > { %v407_v19 = vpop.f32.mrb[0].mxu0 }
 0x161   : > { %v408_v20 = vadd.f32 %v668_v18, %v407_v19  ;;  %v727_v21 = vpop.f32.mrb[1].mxu0 }
 0x162   : > { %v410_v22 = vpop.f32.mrb[2].mxu0 }
 0x163   : > { %v411_v23 = vadd.f32 %v668_v18, %v410_v22  ;;  %v728_v24 = vpop.f32.mrb[3].mxu0  ;;  %v414_v25 = vmax.f32 %v408_v20, 0.0 }
 0x165   : > { %v415_v26 = vmax.f32 %v411_v23, 0.0 }
 0x167   : > { %v433_v27 = vpack.c.bf16 %v415_v26, %v414_v25 }
 0x169   : > { %746 = vmatmul.mubr.bf16.vlgmr.msra.gmra.mrb[0].mxu1 %v433_v27 }
 0x23c   : > { %v522_v30 = vpop.f32.mrb[0].mxu1 }
 0x23d   : > { %v523_v31 = vadd.f32 %v678_v29, %v522_v30  ;;  %v747_v32 = vpop.f32.mrb[1].mxu1 }
 0x23e   : > { %v525_v33 = vpop.f32.mrb[2].mxu1 }
 0x23f   : > { %v526_v34 = vadd.f32 %v678_v29, %v525_v33  ;;  %v748_v35 = vpop.f32.mrb[3].mxu1  ;;  %v529_v36 = vmax.f32 %v523_v31, 0.0 }
 0x241   : > { %v530_v37 = vmax.f32 %v526_v34, 0.0 }
 0x243   : > { %v532_v38 = vmax.f32 %v529_v36, %v530_v37 }
 0x245   : > { %v533_v39 = vrot.slane %v532_v38, 4 }
 0x247   : > { %v534_v40 = vmax.f32 %v532_v38, %v533_v39 }
 0x249   : > { %v535_v41 = vrot.slane %v534_v40, 2 }
 0x24b   : > { %v536_v42 = vmax.f32 %v534_v40, %v535_v41 }
 0x24d   : > { %v537_v43 = vrot.slane %v536_v42, 1 }
 0x24f   : > { %v538_v45 = vmax.f32 %v536_v42, %v537_v43 }
 0x251   : > { %v539_v46 = vmax.f32 %v531_v44, %v538_v45 }
 0x253   : > { %540 = vst [vmem:[#allocation2] sm:$0x1] %v539_v46 }
 0x25a   : > { %v544_v47 = vld [vmem:[#allocation2] sm:$0x1] }
 0x25b   : > { %545 = vst [vmem:[%s286_s9] sm:$0x1] %v544_v47 }
 0x25c   : > { %953 = shalt.err (!%p950_p11)
}
 0x25d   : > { %s954_s24 = scalar_lea.hbm %s1290_s7, 16  ;;  %s958_s30 = scalar_lea.hbm %s1344_s5, 32 }
 0x25e   : > { %p955_p0 = scmp.ne.s32.totalorder %s1290_s7, %s954_s24  ;;  %p959_p6 = scmp.lt.u32.totalorder %s1290_s7, %s1344_s5 }
 0x25f   : > { %p960_p7 = scmp.lt.u32.totalorder %s958_s30, %s954_s24  ;;  %p962_p8 = scmp.lt.u32.totalorder %s954_s24, %s1290_s7 }
 0x260   : > { %p956_p4 = pnand %p955_p0, %p1361_p12 }
 0x261   : > { %p961_p2 = por %p960_p7, %p959_p6 }
 0x262   : > { %p957_p13 = pneg %p956_p4 }
 0x263   : > { %p963_p1 = por %p962_p8, %p961_p2 }
 0x265   : > { %p964_p10 = pnand %p963_p1, %p957_p13 }
 0x267   : > { %967 = shalt.err (!%p964_p10)
}
 0x268   : > { %759 = dma.vmem_to_hbm [thread:$0]  (%p1361_p12), %s1292_s11, 16, %s1290_s7, %s547_s14  }
 0x269 PF: > { %s571_s9 = sand.u32 1, %s1006_s18   ;;  %p1362_p3 = scmp.ne.s32.totalorder %s1353_s29, 0 }
 0x26a   : > { %p1363_p5 = scmp.ge.s32.totalorder %s1026_s23, 2  ;;  %s572_s12 = scalar_lea.sflag [#allocation5], %s571_s9 }
 0x26c   : > { %p773_p9 = pnand %p1363_p5, %p1362_p3 }
 0x26e   : > { %1001 = dma.done.wait (!%p773_p9), %s572_s12, 16  }
 0x26f   : > { %1003 = vsyncadd (!%p773_p9), %s572_s12, 4294967280  ;;  %s22_s23 = sadd.s32 1, %s1026_s23   ;;  %s1364_s18 = smov %s1010_s19 }
 0x270   : > { %p19_p11 = scmp.ge.s32.totalorder %s22_s23, 4   ;;  %s1365_s19 = smov %s1014_s20 }
 0x271   : > { %s1366_s20 = smov %s1215_s17  ;;  %s1367_s21 = smov %s1022_s22 }
 0x272   : > { %s1368_s22 = smov %s1370_s8  ;;  %21 = sbr.rel (!%p19_p11) target bundleno = 7 (0x7), region = 101 }
 0x279   :  { %576 = vsyncpa [#allocation4], 1 }
 0x27a   :  { %578 = vsyncpa [#allocation4 + $0x1], 1 }
 0x27b   :  { %579 = vsyncpa [#allocation7], 1 }
 0x27c   :  { %580 = vsyncpa [#allocation5], 1 }
 0x27d   :  { %582 = vsyncpa [#allocation5 + $0x1], 1 }

// kernel: tpu_custom_call.1
= control target key start
LH: loop header
LB: loop body
LE: loop exit
PB: predicated region body
PF: predicated region fallthrough
CT: control target
= control target key end

     0   :  { %10 = vsyncpa [#allocation4], 0  ;;  %s1339_s0 = inlined_call_operand.hbm [shape: bf16[2,16,128], index: 0, kind: input, shape index: {}]   ;;  %s1340_s1 = inlined_call_operand.hbm [shape: bf16[128,128], index: 1, kind: input, shape index: {}]   ;;  %s1341_s2 = inlined_call_operand.vmem [shape: f32[1,128], index: 2, kind: input, shape index: {}]   ;;  %s1342_s3 = inlined_call_operand.hbm [shape: bf16[128,128], index: 3, kind: input, shape index: {}]   ;;  %s1343_s4 = inlined_call_operand.vmem [shape: f32[1,128], index: 4, kind: input, shape index: {}]   ;;  %s1344_s5 = inlined_call_operand.hbm [shape: f32[2,1,128], index: 5, kind: output, shape index: {}]  }
   0x1   :  { %12 = vsyncpa [#allocation4 + $0x1], 0 }
   0x2   :  { %13 = vsyncpa [#allocation7], 0 }
   0x3   :  { %14 = vsyncpa [#allocation5], 0 }
   0x4   :  { %16 = vsyncpa [#allocation5 + $0x1], 0  ;;  %s1067_s18 = smov 0   ;;  %s1069_s19 = smov 0  }
   0x5   :  { %s1071_s20 = smov 0   ;;  %s1073_s21 = smov 0  }
   0x6   :  { %s1075_s22 = smov 0   ;;  %s1077_s23 = smov 0  }
   0x7 LB: > { %s655_s24 = sadd.s32 4294967295, %s1026_s23   ;;  %s656_s25 = sadd.s32 4294967294, %s1026_s23   ;;  %s1026_s23 = sphi %s1077_s23, %s22_s23   ;;  %s1022_s22 = sphi %s1075_s22, %s1368_s22   ;;  %s1018_s21 = sphi %s1073_s21, %s1367_s21   ;;  %s1014_s20 = sphi %s1071_s20, %s1366_s20   ;;  %s1010_s19 = sphi %s1069_s19, %s1365_s19   ;;  %s1006_s18 = sphi %s1067_s18, %s1364_s18  }
   0x8   : > { %p56_p0 = scmp.ne.s32.totalorder %s1010_s19, %s1006_s18  ;;  %p1101_p1 = scmp.eq.s32.totalorder %s655_s24, 0 }
   0x9   : > { %p1105_p2 = scmp.eq.s32.totalorder %s655_s24, 1  ;;  %p170_p3 = scmp.eq.s32.totalorder %s656_s25, 1 }
   0xa   : > { %s1350_s26 = scalar_select %p1101_p1, 1, 0 }
   0xb   : > { %p1111_p4 = por %p1101_p1, %p56_p0  ;;  %p657_p5 = scmp.ge.s32.totalorder %s1026_s23, 1 }
   0xc   : > { %p1116_p6 = por %p170_p3, %p56_p0  ;;  %p177_p7 = scmp.lt.s32.totalorder %s1026_s23, 3 }
   0xd   : > { %s1352_s28 = scalar_select %p1111_p4, 1, 0 }
   0xe   : > { %s1353_s29 = scalar_select %p1116_p6, 1, 0 }
   0xf   : > { %p1121_p8 = pnand %p657_p5, %p177_p7  ;;  %s1028_s6 = smov [#allocation6]  }
  0x10   : > { %s189_s7 = sshll.u32 %s1028_s6, 4  ;;  %s1029_s9 = smov [#allocation8]   ;;  %s1125_s7 = int_to_ptr.vmem [resolvable:$true] %s189_s7 }
  0x11   : > { %p761_p9 = pneg %p1121_p8  ;;  %s205_s10 = sshll.u32 %s1029_s9, 4  ;;  %s1136_s10 = int_to_ptr.vmem [resolvable:$true] %s205_s10 }
  0x12   : > { %s854_s13 = scalar_lea.hbm %s1340_s1, 1024 }
  0x13   : > { %p1132_p11 = pnand %p761_p9, %p1101_p1  ;;  %p855_p12 = scmp.ne.s32.totalorder %s1340_s1, %s854_s13 }
  0x14   : > { %p861_p5 = scmp.lt.u32.totalorder %s854_s13, %s1340_s1 }
  0x15   : > { %p856_p13 = pneg %p1132_p11 }
  0x17   : > { %p857_p0 = pnand %p856_p13, %p855_p12 }
  0x19   : > { %p858_p3 = pneg %p857_p0 }
  0x1b   : > { %p863_p7 = pnand %p861_p5, %p858_p3 }
  0x1d   : > { %866 = shalt.err (!%p863_p7)
}
  0x1e   : > { %s867_s24 = scalar_lea.vmem %s1125_s7, 1024  ;;  %p875_p1 = scmp.lt.s32.totalorder %s1125_s7, %s1125_s7 }
  0x1f   : > { %p868_p9 = scmp.ne.s32.totalorder %s1125_s7, %s867_s24  ;;  %p876_p12 = scmp.lt.s32.totalorder %s867_s24, %s867_s24 }
  0x21   : > { %p870_p10 = pnand %p868_p9, %p856_p13  ;;  %p877_p0 = por %p876_p12, %p875_p1 }
  0x23   : > { %p871_p6 = pneg %p870_p10 }
  0x25   : > { %p878_p4 = pnand %p877_p0, %p871_p6 }
  0x27   : > { %881 = shalt.err (!%p878_p4)
}
  0x28   : > { %s1348_s25 = smov 64   ;;  %s1031_s6 = smov 4  }
  0x29   : > { %764 = dma.hbm_to_vmem [thread:$0]  (!%p1132_p11), %s1340_s1, 1024, %s1125_s7, [#allocation7], %s1348_s25, %s1348_s25, %s1031_s6  }
  0x2a   : > { %s882_s14 = scalar_lea.hbm %s1342_s3, 1024 }
  0x2b   : > { %p883_p1 = scmp.ne.s32.totalorder %s1342_s3, %s882_s14  ;;  %p889_p10 = scmp.lt.u32.totalorder %s882_s14, %s1342_s3 }
  0x2d   : > { %p885_p4 = pnand %p883_p1, %p856_p13 }
  0x2f   : > { %p886_p6 = pneg %p885_p4 }
  0x31   : > { %p891_p3 = pnand %p889_p10, %p886_p6 }
  0x33   : > { %894 = shalt.err (!%p891_p3)
}
  0x34   : > { %s895_s7 = scalar_lea.vmem %s1136_s10, 1024  ;;  %p903_p12 = scmp.lt.s32.totalorder %s1136_s10, %s1136_s10 }
  0x35   : > { %p896_p5 = scmp.ne.s32.totalorder %s1136_s10, %s895_s7  ;;  %p904_p0 = scmp.lt.s32.totalorder %s895_s7, %s895_s7 }
  0x37   : > { %p898_p7 = pnand %p896_p5, %p856_p13  ;;  %p905_p1 = por %p904_p0, %p903_p12 }
  0x39   : > { %p899_p9 = pneg %p898_p7 }
  0x3b   : > { %p906_p4 = pnand %p905_p1, %p899_p9 }
  0x3d   : > { %909 = shalt.err (!%p906_p4)
}
  0x3e   : > { %767 = dma.hbm_to_vmem [thread:$0]  (!%p1132_p11), %s1342_s3, 1024, %s1136_s10, [#allocation7], %s1348_s25, %s1348_s25, %s1031_s6  }
  0x3f   : > { %s34_s8 = sadd.s32 1, %s1022_s22  ;;  %s43_s12 = sadd.s32 1, %s1014_s20 }
  0x40   : > { %p36_p13 = scmp.ge.s32.totalorder %s34_s8, 2  ;;  %p50_p6 = scmp.ne.s32.totalorder %s1014_s20, %s1010_s19 }
  0x41   : > { %p51_p10 = scmp.eq.s32.totalorder %s1026_s23, 0  ;;  %p778_p3 = scmp.lt.s32.totalorder %s1026_s23, 2 }
  0x42   : > { %s1370_s8 = smov (%p36_p13, %s34_s8), 0  ;;  %p1206_p7 = por %p1105_p2, %p50_p6 }
  0x43   : > { %p52_p5 = por %p51_p10, %p50_p6  ;;  %s38_s14 = ssub.s32 %s1022_s22, %s1370_s8 }
  0x44   : > { %s1356_s13 = scalar_select %p1206_p7, 1, 0 }
  0x45   : > { %s222_s15 = sand.u32 1, %s1014_s20   ;;  %p41_p9 = scmp.eq.s32.totalorder %s38_s14, 0 }
  0x46   : > { %s661_s10 = sshll.u32 %s222_s15, 3  ;;  %s690_s16 = sshll.u32 %s1022_s22, 7 }
  0x47   : > { %s1215_s17 = scalar_select %p41_p9, %s1014_s20, %s43_s12  }
  0x48   : > { %s1220_s9 = scalar_lea.hbm %s1339_s0, %s690_s16  ;;  %s226_s27 = scalar_lea.vmem [#allocation3], %s661_s10 }
  0x49   : > { %s235_s11 = sshll.u32 %s226_s27, 4  ;;  %p1224_p2 = pnand %p778_p3, %p52_p5  ;;  %s1228_s11 = int_to_ptr.vmem [resolvable:$true] %s235_s11 }
  0x4a   : > { %s1230_s12 = scalar_lea.sflag [#allocation4], %s222_s15  ;;  %s910_s14 = scalar_lea.hbm %s1220_s9, 128 }
  0x4b   : > { %p911_p11 = scmp.ne.s32.totalorder %s1220_s9, %s910_s14  ;;  %p912_p12 = pneg %p1224_p2 }
  0x4c   : > { %s915_s24 = scalar_lea.hbm %s1339_s0, 256  ;;  %p916_p4 = scmp.lt.u32.totalorder %s1220_s9, %s1339_s0 }
  0x4d   : > { %p913_p0 = pnand %p912_p12, %p911_p11  ;;  %p917_p13 = scmp.lt.u32.totalorder %s915_s24, %s910_s14 }
  0x4e   : > { %p919_p10 = scmp.lt.u32.totalorder %s910_s14, %s1220_s9 }
  0x4f   : > { %p914_p1 = pneg %p913_p0  ;;  %p918_p6 = por %p917_p13, %p916_p4 }
  0x51   : > { %p920_p3 = por %p919_p10, %p918_p6 }
  0x53   : > { %p921_p5 = pnand %p920_p3, %p914_p1 }
  0x55   : > { %924 = shalt.err (!%p921_p5)
}
  0x56   : > { %s925_s15 = scalar_lea.vmem %s1228_s11, 128  ;;  %s1032_s10 = smov [#allocation3]  }
  0x57   : > { %p926_p9 = scmp.ne.s32.totalorder %s1228_s11, %s925_s15  ;;  %s930_s16 = sshll.u32 %s1032_s10, 4  ;;  %s931_s16 = int_to_ptr.vmem [resolvable:$false] %s930_s16 }
  0x58   : > { %s932_s7 = scalar_lea.vmem %s931_s16, 256  ;;  %p933_p7 = scmp.lt.s32.totalorder %s1228_s11, %s931_s16 }
  0x59   : > { %p928_p11 = pnand %p926_p9, %p912_p12  ;;  %p934_p4 = scmp.lt.s32.totalorder %s932_s7, %s925_s15 }
  0x5b   : > { %p929_p0 = pneg %p928_p11  ;;  %p935_p13 = por %p934_p4, %p933_p7 }
  0x5d   : > { %p936_p6 = pnand %p935_p13, %p929_p0 }
  0x5f   : > { %939 = shalt.err (!%p936_p6)
}
  0x60   : > { %s1358_s14 = smov 64   ;;  %247 = sbr.rel (%p1121_p8) target bundleno = 617 (0x269), region = 40 }
  0x61   : > { %771 = dma.hbm_to_vmem [thread:$0]  (!%p1224_p2), %s1220_s9, 128, %s1228_s11, %s1230_s12, %s1358_s14, %s1358_s14, %s1031_s6  }
  0x62   : > { %s1264_s24 = sand.u32 (!%p1121_p8), 1, %s1010_s19   ;;  %p1359_p7 = scmp.ne.s32.totalorder (!%p1121_p8), %s1352_s28, 0 }
  0x63   : > { %s665_s27 = sshll.u32 (!%p1121_p8), %s1264_s24, 3  ;;  %s250_s15 = scalar_lea.sflag (!%p1121_p8), [#allocation4], %s1264_s24 }
  0x64   : > { %s1268_s10 = scalar_lea.vmem (!%p1121_p8), [#allocation3], %s665_s27 }
  0x67   : > { %993 = dma.done.wait (%p1359_p7), %s250_s15, 128  }
  0x68   : > { %995 = vsyncadd (%p1359_p7), %s250_s15, 4294967168  ;;  %p1360_p2 = scmp.ne.s32.totalorder %s1350_s26, 0 }
  0x6a   : > { %997 = dma.done.wait (%p1360_p2), [#allocation7], 2048  }
  0x6b   : > { %999 = vsyncadd (%p1360_p2), [#allocation7], 4294965248  ;;  %v1033_v0 = vmov 0.0   ;;  %vm1034_vm0 = vmmov 0   ;;  %v837_v1 = vld [vmem:[#allocation6] sm:$0xff]   ;;  %v838_v2 = vld [vmem:[#allocation6 + $0x8] sm:$0xff]  }
  0x6c   : > { %709 = vmatprep.subr.bf16.mxu0 %v1033_v0  ;;  %725 = vmatprep.mubr.msk.bf16.mxu0 %vm1034_vm0, %v1033_v0  ;;  %v839_v3 = vld [vmem:[#allocation6 + $0x10] sm:$0xff]   ;;  %v846_v4 = vld [vmem:[#allocation8] sm:$0xff]   ;;  %v840_v5 = vld [vmem:[#allocation6 + $0x18] sm:$0xff]   ;;  %v1035_v28 = vmov -inf   ;;  %s687_s6 = sshll.u32 %s1018_s21, 4  ;;  %s286_s9 = scalar_lea.vmem [#allocation9], %s1264_s24 }
  0x6d   : > { %729 = vmatprep.subr.bf16.mxu1 %v1033_v0  ;;  %745 = vmatprep.mubr.msk.bf16.mxu1 %vm1034_vm0, %v1033_v0  ;;  %v847_v6 = vld [vmem:[#allocation8 + $0x8] sm:$0xff]   ;;  %v841_v7 = vld [vmem:[#allocation6 + $0x20] sm:$0xff]   ;;  %v848_v8 = vld [vmem:[#allocation8 + $0x10] sm:$0xff]   ;;  %293 = vst [vmem:[#allocation2] sm:$0x1] %v1035_v28  ;;  %s559_s11 = sshll.u32 %s286_s9, 4  ;;  %s1290_s7 = scalar_lea.hbm %s1344_s5, %s687_s6  ;;  %s1292_s11 = int_to_ptr.vmem [resolvable:$true] %s559_s11 }
  0x6e   : > { %710 = vmatpush3.bf16.msra.mxu0 %v837_v1  ;;  %730 = vmatpush3.bf16.msra.mxu1 %v846_v4  ;;  %v842_v9 = vld [vmem:[#allocation6 + $0x28] sm:$0xff]   ;;  %v849_v10 = vld [vmem:[#allocation8 + $0x18] sm:$0xff]   ;;  %v843_v11 = vld [vmem:[#allocation6 + $0x30] sm:$0xff]   ;;  %s547_s14 = scalar_lea.sflag [#allocation5], %s1264_s24  ;;  %s940_s27 = scalar_lea.vmem %s1292_s11, 16 }
  0x6f   : > { %711 = vmatprep.subr.bf16.mxu0 %v1033_v0  ;;  %731 = vmatprep.subr.bf16.mxu1 %v1033_v0  ;;  %v850_v12 = vld [vmem:[#allocation8 + $0x20] sm:$0xff]   ;;  %v844_v13 = vld [vmem:[#allocation6 + $0x38] sm:$0xff]   ;;  %v851_v14 = vld [vmem:[#allocation8 + $0x28] sm:$0xff]   ;;  %p941_p8 = scmp.ne.s32.totalorder %s1292_s11, %s940_s27  ;;  %p1361_p12 = scmp.ne.s32.totalorder %s1356_s13, 0 }
  0x70   : > { %v845_v15 = vld [vmem:[%s1268_s10] sm:$0xff]   ;;  %v668_v18 = vld [vmem:[%s1341_s2] ss:$0 sm:$0xff]  ;;  %s1036_s21 = smov [#allocation9]  }
  0x71   : > { %v852_v16 = vld [vmem:[#allocation8 + $0x30] sm:$0xff]   ;;  %v853_v17 = vld [vmem:[#allocation8 + $0x38] sm:$0xff]   ;;  %v678_v29 = vld [vmem:[%s1343_s4] ss:$0 sm:$0xff]  ;;  %p942_p1 = pnand %p941_p8, %p1361_p12  ;;  %s944_s15 = sshll.u32 %s1036_s21, 4  ;;  %s945_s15 = int_to_ptr.vmem [resolvable:$false] %s944_s15 }
  0x72   : > { %712 = vmatpush3.bf16.msra.mxu0 %v838_v2  ;;  %732 = vmatpush3.bf16.msra.mxu1 %v847_v6  ;;  %s946_s10 = scalar_lea.vmem %s945_s15, 32  ;;  %p947_p3 = scmp.lt.s32.totalorder %s1292_s11, %s945_s15 }
  0x73   : > { %713 = vmatprep.subr.bf16.mxu0 %v1033_v0  ;;  %733 = vmatprep.subr.bf16.mxu1 %v1033_v0  ;;  %p943_p10 = pneg %p942_p1  ;;  %p948_p5 = scmp.lt.s32.totalorder %s946_s10, %s940_s27 }
  0x74   : > { %v531_v44 = vld [vmem:[#allocation2] sm:$0x1] }
  0x75   : > { %p949_p9 = por %p948_p5, %p947_p3 }
  0x76   : > { %714 = vmatpush3.bf16.msra.mxu0 %v839_v3  ;;  %734 = vmatpush3.bf16.msra.mxu1 %v848_v8 }
  0x77   : > { %715 = vmatprep.subr.bf16.mxu0 %v1033_v0  ;;  %735 = vmatprep.subr.bf16.mxu1 %v1033_v0  ;;  %p950_p11 = pnand %p949_p9, %p943_p10 }
  0x7a   : > { %716 = vmatpush3.bf16.msra.mxu0 %v840_v5  ;;  %736 = vmatpush3.bf16.msra.mxu1 %v849_v10 }
  0x7b   : > { %717 = vmatprep.subr.bf16.mxu0 %v1033_v0  ;;  %737 = vmatprep.subr.bf16.mxu1 %v1033_v0 }
  0x7e   : > { %718 = vmatpush3.bf16.msra.mxu0 %v841_v7  ;;  %738 = vmatpush3.bf16.msra.mxu1 %v850_v12 }
  0x7f   : > { %719 = vmatprep.subr.bf16.mxu0 %v1033_v0  ;;  %739 = vmatprep.subr.bf16.mxu1 %v1033_v0 }
  0x82   : > { %720 = vmatpush3.bf16.msra.mxu0 %v842_v9  ;;  %740 = vmatpush3.bf16.msra.mxu1 %v851_v14 }
  0x83   : > { %721 = vmatprep.subr.bf16.mxu0 %v1033_v0  ;;  %741 = vmatprep.subr.bf16.mxu1 %v1033_v0 }
  0x86   : > { %722 = vmatpush3.bf16.msra.mxu0 %v843_v11  ;;  %742 = vmatpush3.bf16.msra.mxu1 %v852_v16 }
  0x87   : > { %723 = vmatprep.subr.bf16.mxu0 %v1033_v0  ;;  %743 = vmatprep.subr.bf16.mxu1 %v1033_v0 }
  0x8a   : > { %724 = vmatpush3.bf16.msra.mxu0 %v844_v13  ;;  %744 = vmatpush3.bf16.msra.mxu1 %v853_v17 }
  0x8d   : > { %726 = vmatmul.mubr.bf16.vlgmr.msra.gmra.mrb[0].mxu0 %v845_v15 }
 0x160   : > { %v407_v19 = vpop.f32.mrb[0].mxu0 }
 0x161   : > { %v408_v20 = vadd.f32 %v668_v18, %v407_v19  ;;  %v727_v21 = vpop.f32.mrb[1].mxu0 }
 0x162   : > { %v410_v22 = vpop.f32.mrb[2].mxu0 }
 0x163   : > { %v411_v23 = vadd.f32 %v668_v18, %v410_v22  ;;  %v728_v24 = vpop.f32.mrb[3].mxu0  ;;  %v414_v25 = vmax.f32 %v408_v20, 0.0 }
 0x165   : > { %v415_v26 = vmax.f32 %v411_v23, 0.0 }
 0x167   : > { %v433_v27 = vpack.c.bf16 %v415_v26, %v414_v25 }
 0x169   : > { %746 = vmatmul.mubr.bf16.vlgmr.msra.gmra.mrb[0].mxu1 %v433_v27 }
 0x23c   : > { %v522_v30 = vpop.f32.mrb[0].mxu1 }
 0x23d   : > { %v523_v31 = vadd.f32 %v678_v29, %v522_v30  ;;  %v747_v32 = vpop.f32.mrb[1].mxu1 }
 0x23e   : > { %v525_v33 = vpop.f32.mrb[2].mxu1 }
 0x23f   : > { %v526_v34 = vadd.f32 %v678_v29, %v525_v33  ;;  %v748_v35 = vpop.f32.mrb[3].mxu1  ;;  %v529_v36 = vmax.f32 %v523_v31, 0.0 }
 0x241   : > { %v530_v37 = vmax.f32 %v526_v34, 0.0 }
 0x243   : > { %v532_v38 = vmax.f32 %v529_v36, %v530_v37 }
 0x245   : > { %v533_v39 = vrot.slane %v532_v38, 4 }
 0x247   : > { %v534_v40 = vmax.f32 %v532_v38, %v533_v39 }
 0x249   : > { %v535_v41 = vrot.slane %v534_v40, 2 }
 0x24b   : > { %v536_v42 = vmax.f32 %v534_v40, %v535_v41 }
 0x24d   : > { %v537_v43 = vrot.slane %v536_v42, 1 }
 0x24f   : > { %v538_v45 = vmax.f32 %v536_v42, %v537_v43 }
 0x251   : > { %v539_v46 = vmax.f32 %v531_v44, %v538_v45 }
 0x253   : > { %540 = vst [vmem:[#allocation2] sm:$0x1] %v539_v46 }
 0x25a   : > { %v544_v47 = vld [vmem:[#allocation2] sm:$0x1] }
 0x25b   : > { %545 = vst [vmem:[%s286_s9] sm:$0x1] %v544_v47 }
 0x25c   : > { %953 = shalt.err (!%p950_p11)
}
 0x25d   : > { %s954_s24 = scalar_lea.hbm %s1290_s7, 16  ;;  %s958_s30 = scalar_lea.hbm %s1344_s5, 32 }
 0x25e   : > { %p955_p0 = scmp.ne.s32.totalorder %s1290_s7, %s954_s24  ;;  %p959_p6 = scmp.lt.u32.totalorder %s1290_s7, %s1344_s5 }
 0x25f   : > { %p960_p7 = scmp.lt.u32.totalorder %s958_s30, %s954_s24  ;;  %p962_p8 = scmp.lt.u32.totalorder %s954_s24, %s1290_s7 }
 0x260   : > { %p956_p4 = pnand %p955_p0, %p1361_p12 }
 0x261   : > { %p961_p2 = por %p960_p7, %p959_p6 }
 0x262   : > { %p957_p13 = pneg %p956_p4 }
 0x263   : > { %p963_p1 = por %p962_p8, %p961_p2 }
 0x265   : > { %p964_p10 = pnand %p963_p1, %p957_p13 }
 0x267   : > { %967 = shalt.err (!%p964_p10)
}
 0x268   : > { %759 = dma.vmem_to_hbm [thread:$0]  (%p1361_p12), %s1292_s11, 16, %s1290_s7, %s547_s14  }
 0x269 PF: > { %s571_s9 = sand.u32 1, %s1006_s18   ;;  %p1362_p3 = scmp.ne.s32.totalorder %s1353_s29, 0 }
 0x26a   : > { %p1363_p5 = scmp.ge.s32.totalorder %s1026_s23, 2  ;;  %s572_s12 = scalar_lea.sflag [#allocation5], %s571_s9 }
 0x26c   : > { %p773_p9 = pnand %p1363_p5, %p1362_p3 }
 0x26e   : > { %1001 = dma.done.wait (!%p773_p9), %s572_s12, 16  }
 0x26f   : > { %1003 = vsyncadd (!%p773_p9), %s572_s12, 4294967280  ;;  %s22_s23 = sadd.s32 1, %s1026_s23   ;;  %s1364_s18 = smov %s1010_s19 }
 0x270   : > { %p19_p11 = scmp.ge.s32.totalorder %s22_s23, 4   ;;  %s1365_s19 = smov %s1014_s20 }
 0x271   : > { %s1366_s20 = smov %s1215_s17  ;;  %s1367_s21 = smov %s1022_s22 }
 0x272   : > { %s1368_s22 = smov %s1370_s8  ;;  %21 = sbr.rel (!%p19_p11) target bundleno = 7 (0x7), region = 101 }
 0x279   :  { %576 = vsyncpa [#allocation4], 1 }
 0x27a   :  { %578 = vsyncpa [#allocation4 + $0x1], 1 }
 0x27b   :  { %579 = vsyncpa [#allocation7], 1 }
 0x27c   :  { %580 = vsyncpa [#allocation5], 1 }
 0x27d   :  { %582 = vsyncpa [#allocation5 + $0x1], 1 }

</bundles_post_ra>
